<compile_context>
chip_gen: v5e
topology: v5e:2x2
jax: 0.10.0
libtpu: 0.0.40
codegen_flags: <defaults>
</compile_context>

<pallas_src>
import jax
import jax.numpy as jnp
from jax import lax
from jax.experimental import pallas as pl
from jax.experimental.pallas import tpu as pltpu

_LANES = 128
_TILE_ROWS = 2048      # (2048, 128) f32 block = 1 MiB per grid step
_CHUNK_ROWS = 64       # in-kernel sub-chunk: (64, 128) f32 = 8 vregs
_SMALL_N = 65536       # below this, fused XLA beats a kernel launch


def _round_up(x, m):
    return -(-x // m) * m


def _num_core_splits():
    """2-way grid split only on v7x (2 TensorCores); 1 elsewhere (safe default)."""
    try:
        kind = jax.devices()[0].device_kind.lower()
    except Exception:
        return 1
    return 2 if ("v7" in kind or "tpu7" in kind) else 1


# ----------------------------------------------------------------------------
# In-kernel helpers: chunked log-sum over one VMEM tile
# ----------------------------------------------------------------------------
def _tile_log_sum(probs_ref, n_chunks, arg_fn):
    """sum(log(arg_fn(p_chunk, chunk_i))) over the whole tile, as (8, 128)."""
    lanes = probs_ref.shape[1]

    def body(ci, acc):
        r0 = pl.multiple_of(ci * _CHUNK_ROWS, _CHUNK_ROWS)
        p = probs_ref[pl.ds(r0, _CHUNK_ROWS), :]
        lg = jnp.log(arg_fn(p, ci))
        return acc + lg.reshape(_CHUNK_ROWS // 8, 8, lanes).sum(axis=0)

    return lax.fori_loop(0, n_chunks, body,
                         jnp.zeros((8, lanes), jnp.float32), unroll=True)


def _tile_log_sum_labeled(probs_ref, labels_ref, n_chunks, arg_fn):
    """Same as _tile_log_sum but arg_fn also sees the int8 labels chunk."""
    lanes = probs_ref.shape[1]

    def body(ci, acc):
        r0 = pl.multiple_of(ci * _CHUNK_ROWS, _CHUNK_ROWS)
        p = probs_ref[pl.ds(r0, _CHUNK_ROWS), :]
        lab = labels_ref[pl.ds(r0, _CHUNK_ROWS), :]
        lg = jnp.log(arg_fn(p, lab, ci))
        return acc + lg.reshape(_CHUNK_ROWS // 8, 8, lanes).sum(axis=0)

    return lax.fori_loop(0, n_chunks, body,
                         jnp.zeros((8, lanes), jnp.float32), unroll=True)


# ----------------------------------------------------------------------------
# Kernels
# ----------------------------------------------------------------------------
def _bce_train_kernel(meta_ref, probs_ref, out_ref):
    # meta_ref : SMEM int32[2] = [num_pos, n_valid]   (scalar prefetch)
    # probs_ref: VMEM f32[r_tile, 128]                (partial last block OK)
    # out_ref  : VMEM f32[8, 128] partial log-sums, resident across axis 1
    c = pl.program_id(0)
    t = pl.program_id(1)
    bps = pl.num_programs(1)

    @pl.when(t == 0)
    def _init():
        out_ref[...] = jnp.zeros_like(out_ref)

    num_pos = meta_ref[0]
    n_valid = meta_ref[1]

    r_tile, lanes = probs_ref.shape
    n_chunks = r_tile // _CHUNK_ROWS
    block_elems = r_tile * lanes
    block_start = (c * bps + t) * block_elems     # nominal flat element range
    block_end = block_start + block_elems

    all_valid = block_end <= n_valid
    all_pos = jnp.logical_and(all_valid, block_end <= num_pos)
    all_neg = jnp.logical_and(all_valid, block_start >= num_pos)
    boundary = jnp.logical_not(jnp.logical_or(all_pos, all_neg))

    @pl.when(all_pos)
    def _():  # interior positive tile: log(p), no index math
        out_ref[...] += _tile_log_sum(probs_ref, n_chunks, lambda p, ci: p)

    @pl.when(all_neg)
    def _():  # interior negative tile: log(1 - p), no index math
        out_ref[...] += _tile_log_sum(probs_ref, n_chunks, lambda p, ci: 1.0 - p)

    @pl.when(boundary)
    def _():  # num_pos boundary / ragged-tail / phantom tile: full masking
        row = lax.broadcasted_iota(jnp.int32, (_CHUNK_ROWS, lanes), 0)
        lane = lax.broadcasted_iota(jnp.int32, (_CHUNK_ROWS, lanes), 1)
        idx0 = block_start + row * lanes + lane

        def arg_fn(p, ci):
            idx = idx0 + ci * (_CHUNK_ROWS * lanes)
            a = jnp.where(idx < num_pos, p, 1.0 - p)
            return jnp.where(idx < n_valid, a, 1.0)   # mask BEFORE the log

        out_ref[...] += _tile_log_sum(probs_ref, n_chunks, arg_fn)


def _bce_eval_kernel(meta_ref, probs_ref, labels_ref, out_ref):
    # Reference eval semantics: both label==1 and label==0 positions contribute
    # -log(prob); any other label value is ignored.
    c = pl.program_id(0)
    t = pl.program_id(1)
    bps = pl.num_programs(1)

    @pl.when(t == 0)
    def _init():
        out_ref[...] = jnp.zeros_like(out_ref)

    n_valid = meta_ref[0]

    r_tile, lanes = probs_ref.shape
    n_chunks = r_tile // _CHUNK_ROWS
    block_elems = r_tile * lanes
    block_start = (c * bps + t) * block_elems
    all_valid = (block_start + block_elems) <= n_valid

    @pl.when(all_valid)
    def _():  # interior tile: only the label test, no iota/index math
        def arg_fn(p, lab, ci):
            sel = jnp.logical_or(lab == 0, lab == 1)
            return jnp.where(sel, p, 1.0)

        out_ref[...] += _tile_log_sum_labeled(probs_ref, labels_ref, n_chunks, arg_fn)

    @pl.when(jnp.logical_not(all_valid))
    def _():  # ragged tail / phantom tile: also mask idx >= n_valid
        row = lax.broadcasted_iota(jnp.int32, (_CHUNK_ROWS, lanes), 0)
        lane = lax.broadcasted_iota(jnp.int32, (_CHUNK_ROWS, lanes), 1)
        idx0 = block_start + row * lanes + lane

        def arg_fn(p, lab, ci):
            idx = idx0 + ci * (_CHUNK_ROWS * lanes)
            sel = jnp.logical_and(idx < n_valid,
                                  jnp.logical_or(lab == 0, lab == 1))
            return jnp.where(sel, p, 1.0)              # mask BEFORE the log

        out_ref[...] += _tile_log_sum_labeled(probs_ref, labels_ref, n_chunks, arg_fn)


# ----------------------------------------------------------------------------
# Wrapper
# ----------------------------------------------------------------------------
def _plan(n, splits):
    """Static tiling plan: (rows, tile_rows, real_blocks, blocks_per_split)."""
    rows = -(-n // _LANES)
    r_tile = min(_TILE_ROWS, _round_up(rows, _CHUNK_ROWS))   # multiple of 64
    blocks = -(-rows // r_tile)
    bps = -(-blocks // splits)
    return rows, r_tile, blocks, bps


def _as_rows(x_1d, rows, fill):
    """Reshape flat vector to (rows, 128); pad only the <128-element remainder."""
    n = x_1d.shape[0]
    rem = n % _LANES
    if rem:
        # Only a <128-element tail pad (still one copy for unaligned n; free when
        # n % 128 == 0, which is the common case for batched training).
        x_1d = jnp.pad(x_1d, (0, _LANES - rem), constant_values=fill)
    return x_1d.reshape(rows, _LANES)


def bce_loss(probs, num_pos=None, labels=None, eval=False, force_kernel=False):
    """JAX/Pallas equivalent of BCELoss.forward. Returns a scalar float32."""
    probs = jnp.asarray(probs, jnp.float32)
    n = probs.shape[0]

    # Tiny inputs: per-pallas_call overhead dominates — let XLA fuse it.
    if n < _SMALL_N and not force_kernel:
        if not eval:
            idx = jnp.arange(n, dtype=jnp.int32)
            arg = jnp.where(idx < jnp.asarray(num_pos, jnp.int32),
                            probs, 1.0 - probs)
        else:
            lab = jnp.asarray(labels)
            sel = jnp.logical_or(lab == 0, lab == 1)
            arg = jnp.where(sel, probs, 1.0)
        return jnp.sum(-jnp.log(arg))

    splits = _num_core_splits()
    rows, r_tile, blocks, bps = _plan(n, splits)
    probs_2d = _as_rows(probs, rows, 0.5)     # pad value is masked in-kernel

    grid = (splits, bps)

    def data_idx(c, t, meta):
        # Clamp phantom blocks (only possible when splits > 1 and blocks is not
        # a multiple of splits); their nominal index range is >= n so the kernel
        # masks their contribution to exactly zero.
        return (jnp.minimum(c * bps + t, blocks - 1), 0)

    data_spec = pl.BlockSpec((r_tile, _LANES), data_idx)
    out_spec = pl.BlockSpec((8, _LANES), lambda c, t, meta: (c, 0))
    out_shape = jax.ShapeDtypeStruct((splits * 8, _LANES), jnp.float32)
    cparams = pltpu.CompilerParams(
        dimension_semantics=("parallel", "arbitrary"))

    if not eval:
        meta = jnp.stack([jnp.asarray(num_pos, jnp.int32),
                          jnp.asarray(n, jnp.int32)])
        cost = pl.CostEstimate(flops=4 * n, transcendentals=n,
                               bytes_accessed=4 * n + splits * 8 * _LANES * 4)
        partials = pl.pallas_call(
            _bce_train_kernel,
            out_shape=out_shape,
            grid_spec=pltpu.PrefetchScalarGridSpec(
                num_scalar_prefetch=1,
                grid=grid,
                in_specs=[data_spec],
                out_specs=out_spec),
            compiler_params=cparams,
            cost_estimate=cost,
        )(meta, probs_2d)
    else:
        lab = jnp.asarray(labels)
        if lab.dtype != jnp.int8:
            lab = lab.astype(jnp.int8)        # cast once; int8 halves+ label traffic
        labels_2d = _as_rows(lab, rows, 2)    # pad value 2 -> never selected
        meta = jnp.asarray([n], jnp.int32)
        cost = pl.CostEstimate(flops=5 * n, transcendentals=n,
                               bytes_accessed=5 * n + splits * 8 * _LANES * 4)
        partials = pl.pallas_call(
            _bce_eval_kernel,
            out_shape=out_shape,
            grid_spec=pltpu.PrefetchScalarGridSpec(
                num_scalar_prefetch=1,
                grid=grid,
                in_specs=[data_spec, data_spec],
                out_specs=out_spec),
            compiler_params=cparams,
            cost_estimate=cost,
        )(meta, probs_2d, labels_2d)

    # Kernel accumulates +log(arg); negate once on the tiny (splits*8, 128) sums.
    return -jnp.sum(partials)


# ----------------------------------------------------------------------------
# Pure-JAX references (for correctness checks)
# ----------------------------------------------------------------------------
def _ref_train(probs, num_pos):
    pos = probs[:num_pos]
    neg = probs[num_pos:]
    return jnp.sum(-jnp.log(pos)) + jnp.sum(-jnp.log(1.0 - neg))


def _ref_eval(probs, labels):
    sel = jnp.logical_or(labels == 1, labels == 0)
    return jnp.sum(jnp.where(sel, -jnp.log(probs), 0.0))


if __name__ == "__main__":
    key = jax.random.PRNGKey(0)
    k1, k2, k3, k4 = jax.random.split(key, 4)

    # --- small case (matches module docstring shapes); forced through kernel
    num_pos = 3
    neg_ratio = 2
    n_small = num_pos + num_pos * neg_ratio                    # 9 samples
    probs_s = jax.nn.sigmoid(jax.random.normal(k1, (n_small,), dtype=jnp.float32))
    labels_s = jax.random.randint(k2, (n_small,), 0, 2, dtype=jnp.int32)

    lt_s = bce_loss(probs_s, num_pos=num_pos, force_kernel=True)
    le_s = bce_loss(probs_s, labels=labels_s, eval=True, force_kernel=True)
    jax.block_until_ready((lt_s, le_s))

    assert jnp.allclose(lt_s, _ref_train(probs_s, num_pos), rtol=1e-5, atol=1e-5), (
        lt_s, _ref_train(probs_s, num_pos))
    assert jnp.allclose(le_s, _ref_eval(probs_s, labels_s), rtol=1e-5, atol=1e-5), (
        le_s, _ref_eval(probs_s, labels_s))

    # --- larger ragged case: several 1 MiB blocks -> exercises the fast
    # all-pos / all-neg interior branches, the num_pos boundary block and the
    # ragged (partial) tail block for both kernels.
    n_big = 1_000_003
    num_pos_big = 300_000
    probs_b = jax.nn.sigmoid(jax.random.normal(k3, (n_big,), dtype=jnp.float32))
    labels_b = jax.random.randint(k4, (n_big,), 0, 2, dtype=jnp.int32)

    lt_b = bce_loss(probs_b, num_pos=num_pos_big)
    le_b = bce_loss(probs_b, labels=labels_b, eval=True)
    jax.block_until_ready((lt_b, le_b))

    assert jnp.allclose(lt_b, _ref_train(probs_b, num_pos_big), rtol=1e-4, atol=1e-1), (
        lt_b, _ref_train(probs_b, num_pos_big))
    assert jnp.allclose(le_b, _ref_eval(probs_b, labels_b), rtol=1e-4, atol=1e-1), (
        le_b, _ref_eval(probs_b, labels_b))

    print("KERNEL_OK")
</pallas_src>

<mosaic_0001>
module attributes {stable_mosaic.version = 11 : i64} {
  func.func @_bce_train_kernel(%arg0: i32, %arg1: i32, %arg2: memref<2xi32, #tpu.memory_space<smem>>, %arg3: memref<64x128xf32, #tpu.memory_space<vmem>>, %arg4: memref<8x128xf32, #tpu.memory_space<vmem>>) attributes {dimension_semantics = [#tpu.dimension_semantics<parallel>, #tpu.dimension_semantics<arbitrary>], iteration_bounds = array<i64: 1, 1>, scalar_prefetch = 1 : i64, scratch_operands = 0 : i64, tpu.core_type = #tpu.core_type<tc>, window_params = [{transform_indices = @transform_0, window_bounds = array<i64: 64, 128>}, {transform_indices = @transform_1, window_bounds = array<i64: 8, 128>}]} {
    %c0_i32 = arith.constant 0 : i32
    %0 = arith.cmpi eq, %arg1, %c0_i32 : i32
    %1 = arith.extui %0 : i1 to i32
    %c0_i32_0 = arith.constant 0 : i32
    %2 = arith.cmpi ne, %1, %c0_i32_0 : i32
    scf.if %2 {
      %cst = arith.constant 0.000000e+00 : f32
      %22 = vector.broadcast %cst : f32 to vector<8x128xf32>
      %c0_5 = arith.constant 0 : index
      %c0_6 = arith.constant 0 : index
      %23 = vector.load %arg4[%c0_5, %c0_6] : memref<8x128xf32, #tpu.memory_space<vmem>>, vector<8x128xf32>
      tpu.vector_store %arg4[%c0_5, %c0_6], %22 {strides = array<i32>} : memref<8x128xf32, #tpu.memory_space<vmem>>, vector<8x128xf32>,
    } else {
    }
    %c0 = arith.constant 0 : index
    %3 = memref.load %arg2[%c0] : memref<2xi32, #tpu.memory_space<smem>>
    %c1 = arith.constant 1 : index
    %4 = memref.load %arg2[%c1] : memref<2xi32, #tpu.memory_space<smem>>
    %c1_i32 = arith.constant 1 : i32
    %5 = arith.muli %arg0, %c1_i32 : i32
    %6 = arith.addi %5, %arg1 : i32
    %c8192_i32 = arith.constant 8192 : i32
    %7 = arith.muli %6, %c8192_i32 : i32
    %c8192_i32_1 = arith.constant 8192 : i32
    %8 = arith.addi %7, %c8192_i32_1 : i32
    %9 = arith.cmpi sle, %8, %4 : i32
    %10 = arith.cmpi sle, %8, %3 : i32
    %11 = arith.andi %9, %10 : i1
    %12 = arith.cmpi sge, %7, %3 : i32
    %13 = arith.andi %9, %12 : i1
    %14 = arith.ori %11, %13 : i1
    %true = arith.constant true
    %15 = arith.xori %14, %true : i1
    %16 = arith.extui %11 : i1 to i32
    %c0_i32_2 = arith.constant 0 : i32
    %17 = arith.cmpi ne, %16, %c0_i32_2 : i32
    scf.if %17 {
      %c0_5 = arith.constant 0 : index
      %c0_6 = arith.constant 0 : index
      %22 = vector.load %arg4[%c0_5, %c0_6] : memref<8x128xf32, #tpu.memory_space<vmem>>, vector<8x128xf32>
      %cst = arith.constant 0.000000e+00 : f32
      %23 = vector.broadcast %cst : f32 to vector<8x128xf32>
      %c0_i32_7 = arith.constant 0 : i32
      %c64_i32 = arith.constant 64 : i32
      %24 = arith.muli %c0_i32_7, %c64_i32 : i32
      %25 = tpu.assume_multiple %24, 64 : i32
      %26 = arith.index_cast %25 : i32 to index
      %c0_8 = arith.constant 0 : index
      %27 = vector.load %arg3[%26, %c0_8] : memref<64x128xf32, #tpu.memory_space<vmem>>, vector<64x128xf32>
      %28 = math.log %27 : vector<64x128xf32>
      %29 = vector.shape_cast %28 : vector<64x128xf32> to vector<8x8x128xf32>
      %cst_9 = arith.constant dense<0.000000e+00> : vector<8x128xf32>
      %30 = vector.multi_reduction <add>, %29, %cst_9 [0] : vector<8x8x128xf32> to vector<8x128xf32>
      %31 = arith.addf %23, %30 : vector<8x128xf32>
      %c1_i32_10 = arith.constant 1 : i32
      %32 = arith.addf %22, %31 : vector<8x128xf32>
      %c0_11 = arith.constant 0 : index
      %c0_12 = arith.constant 0 : index
      %33 = vector.load %arg4[%c0_11, %c0_12] : memref<8x128xf32, #tpu.memory_space<vmem>>, vector<8x128xf32>
      tpu.vector_store %arg4[%c0_11, %c0_12], %32 {strides = array<i32>} : memref<8x128xf32, #tpu.memory_space<vmem>>, vector<8x128xf32>,
    } else {
    }
    %18 = arith.extui %13 : i1 to i32
    %c0_i32_3 = arith.constant 0 : i32
    %19 = arith.cmpi ne, %18, %c0_i32_3 : i32
    scf.if %19 {
      %c0_5 = arith.constant 0 : index
      %c0_6 = arith.constant 0 : index
      %22 = vector.load %arg4[%c0_5, %c0_6] : memref<8x128xf32, #tpu.memory_space<vmem>>, vector<8x128xf32>
      %cst = arith.constant 0.000000e+00 : f32
      %23 = vector.broadcast %cst : f32 to vector<8x128xf32>
      %c0_i32_7 = arith.constant 0 : i32
      %c64_i32 = arith.constant 64 : i32
      %24 = arith.muli %c0_i32_7, %c64_i32 : i32
      %25 = tpu.assume_multiple %24, 64 : i32
      %26 = arith.index_cast %25 : i32 to index
      %c0_8 = arith.constant 0 : index
      %27 = vector.load %arg3[%26, %c0_8] : memref<64x128xf32, #tpu.memory_space<vmem>>, vector<64x128xf32>
      %cst_9 = arith.constant 1.000000e+00 : f32
      %28 = vector.broadcast %cst_9 : f32 to vector<64x128xf32>
      %29 = arith.subf %28, %27 : vector<64x128xf32>
      %30 = math.log %29 : vector<64x128xf32>
      %31 = vector.shape_cast %30 : vector<64x128xf32> to vector<8x8x128xf32>
      %cst_10 = arith.constant dense<0.000000e+00> : vector<8x128xf32>
      %32 = vector.multi_reduction <add>, %31, %cst_10 [0] : vector<8x8x128xf32> to vector<8x128xf32>
      %33 = arith.addf %23, %32 : vector<8x128xf32>
      %c1_i32_11 = arith.constant 1 : i32
      %34 = arith.addf %22, %33 : vector<8x128xf32>
      %c0_12 = arith.constant 0 : index
      %c0_13 = arith.constant 0 : index
      %35 = vector.load %arg4[%c0_12, %c0_13] : memref<8x128xf32, #tpu.memory_space<vmem>>, vector<8x128xf32>
      tpu.vector_store %arg4[%c0_12, %c0_13], %34 {strides = array<i32>} : memref<8x128xf32, #tpu.memory_space<vmem>>, vector<8x128xf32>,
    } else {
    }
    %20 = arith.extui %15 : i1 to i32
    %c0_i32_4 = arith.constant 0 : i32
    %21 = arith.cmpi ne, %20, %c0_i32_4 : i32
    scf.if %21 {
      %22 = tpu.iota {dimensions = array<i32: 0>} : vector<64x128xi32>
      %23 = tpu.iota {dimensions = array<i32: 1>} : vector<64x128xi32>
      %c128_i32 = arith.constant 128 : i32
      %24 = vector.broadcast %c128_i32 : i32 to vector<64x128xi32>
      %25 = arith.muli %22, %24 : vector<64x128xi32>
      %26 = vector.broadcast %7 : i32 to vector<64x128xi32>
      %27 = arith.addi %26, %25 : vector<64x128xi32>
      %28 = arith.addi %27, %23 : vector<64x128xi32>
      %c0_5 = arith.constant 0 : index
      %c0_6 = arith.constant 0 : index
      %29 = vector.load %arg4[%c0_5, %c0_6] : memref<8x128xf32, #tpu.memory_space<vmem>>, vector<8x128xf32>
      %cst = arith.constant 0.000000e+00 : f32
      %30 = vector.broadcast %cst : f32 to vector<8x128xf32>
      %c0_i32_7 = arith.constant 0 : i32
      %c64_i32 = arith.constant 64 : i32
      %31 = arith.muli %c0_i32_7, %c64_i32 : i32
      %32 = tpu.assume_multiple %31, 64 : i32
      %33 = arith.index_cast %32 : i32 to index
      %c0_8 = arith.constant 0 : index
      %34 = vector.load %arg3[%33, %c0_8] : memref<64x128xf32, #tpu.memory_space<vmem>>, vector<64x128xf32>
      %c8192_i32_9 = arith.constant 8192 : i32
      %35 = arith.muli %c0_i32_7, %c8192_i32_9 : i32
      %36 = vector.broadcast %35 : i32 to vector<64x128xi32>
      %37 = arith.addi %28, %36 : vector<64x128xi32>
      %38 = vector.broadcast %3 : i32 to vector<64x128xi32>
      %39 = arith.cmpi slt, %37, %38 : vector<64x128xi32>
      %cst_10 = arith.constant 1.000000e+00 : f32
      %40 = vector.broadcast %cst_10 : f32 to vector<64x128xf32>
      %41 = arith.subf %40, %34 : vector<64x128xf32>
      %42 = arith.select %39, %34, %41 : vector<64x128xi1>, vector<64x128xf32>
      %43 = vector.broadcast %4 : i32 to vector<64x128xi32>
      %44 = arith.cmpi slt, %37, %43 : vector<64x128xi32>
      %cst_11 = arith.constant 1.000000e+00 : f32
      %45 = vector.broadcast %cst_11 : f32 to vector<64x128xf32>
      %46 = arith.select %44, %42, %45 : vector<64x128xi1>, vector<64x128xf32>
      %47 = math.log %46 : vector<64x128xf32>
      %48 = vector.shape_cast %47 : vector<64x128xf32> to vector<8x8x128xf32>
      %cst_12 = arith.constant dense<0.000000e+00> : vector<8x128xf32>
      %49 = vector.multi_reduction <add>, %48, %cst_12 [0] : vector<8x8x128xf32> to vector<8x128xf32>
      %50 = arith.addf %30, %49 : vector<8x128xf32>
      %c1_i32_13 = arith.constant 1 : i32
      %51 = arith.addf %29, %50 : vector<8x128xf32>
      %c0_14 = arith.constant 0 : index
      %c0_15 = arith.constant 0 : index
      %52 = vector.load %arg4[%c0_14, %c0_15] : memref<8x128xf32, #tpu.memory_space<vmem>>, vector<8x128xf32>
      tpu.vector_store %arg4[%c0_14, %c0_15], %51 {strides = array<i32>} : memref<8x128xf32, #tpu.memory_space<vmem>>, vector<8x128xf32>,
    } else {
    }
    return
  }
  func.func @transform_0(%arg0: i32, %arg1: i32, %arg2: memref<2xi32, #tpu.memory_space<smem>>) -> (i32, i32) {
    %c1_i32 = arith.constant 1 : i32
    %0 = arith.muli %arg0, %c1_i32 : i32
    %1 = arith.addi %0, %arg1 : i32
    %c0_i32 = arith.constant 0 : i32
    %2 = arith.minsi %1, %c0_i32 : i32
    %c0_i32_0 = arith.constant 0 : i32
    %c0_i32_1 = arith.constant 0 : i32
    return %2, %c0_i32_0 : i32, i32
  }
  func.func @transform_1(%arg0: i32, %arg1: i32, %arg2: memref<2xi32, #tpu.memory_space<smem>>) -> (i32, i32) {
    %c0_i32 = arith.constant 0 : i32
    %c0_i32_0 = arith.constant 0 : i32
    return %arg0, %c0_i32 : i32, i32
  }
}

</mosaic_0001>

<bundles_post_ra>
// kernel: tpu_custom_call.1
= control target key start
LH: loop header
LB: loop body
LE: loop exit
PB: predicated region body
PF: predicated region fallthrough
CT: control target
= control target key end

     0   :  { %s406_s12 = smov [#allocation3]   ;;  %s460_s0 = inlined_call_operand.hbm [shape: s32[2], index: 0, kind: input, shape index: {}]   ;;  %s461_s1 = inlined_call_operand.hbm [shape: f32[1,128], index: 1, kind: input, shape index: {}]   ;;  %s462_s2 = inlined_call_operand.hbm [shape: f32[8,128], index: 2, kind: output, shape index: {}]  }
   0x1   :  { %s8_s11 = sshll.u32 %s460_s0, 4  ;;  %s9_s11 = int_to_ptr.hbm [resolvable:$true] %s8_s11 }
   0x2   :  { %11 = dma.hbm_to_smem %s9_s11, 16, %s406_s12, [#allocation2] }
   0x3   :  { %400 = dma.done.wait [#allocation2], 16 }
   0x4   :  { %401 = vsyncadd [#allocation2], 4294967280 }
   0x5   :  { %14 = sfence }
   0x6   :  { %15 = vsyncpa [#allocation5], 0 }
   0x7   :  { %16 = vsyncpa [#allocation6], 0 }
   0x8   :  { %26 = vsyncadd [#allocation5], 1008  ;;  %s29_s15 = sshll.u32 %s461_s1, 4  ;;  %s407_s16 = smov [#allocation4]   ;;  %s30_s15 = int_to_ptr.hbm [resolvable:$true] %s29_s15 }
   0x9   :  { %s31_s17 = sshll.u32 %s407_s16, 4  ;;  %s408_s18 = smov 16   ;;  %s32_s17 = int_to_ptr.vmem [resolvable:$true] %s31_s17 }
   0xa   :  { %s409_s19 = smov 1  }
   0xb   :  { %37 = dma.hbm_to_vmem [thread:$0]  %s30_s15, 16, %s32_s17, [#allocation5], %s408_s18, %s408_s18, %s409_s19  }
   0xc   :  { %402 = dma.done.wait [#allocation5], 1024  }
   0xd   :  { %403 = vsyncadd [#allocation5], 4294966272  ;;  %s433_s0 = sld [smem:[#allocation3]]  ;;  %v410_v0 = vmov 0.0  }
   0xe   :  { %51 = vst [vmem:[#allocation7] sm:$0xff] %v410_v0  ;;  %s435_s20 = sld [smem:[#allocation3 + $0x1]] }
  0x13   :  { %p284_p0 = scmp.ge.s32.totalorder %s433_s0, 8192  ;;  %p285_p1 = scmp.le.s32.totalorder %s433_s0, 0 }
  0x14   :  { %p283_p2 = scmp.ge.s32.totalorder %s435_s20, 8192 }
  0x16   :  { %p59_p3 = pnand %p284_p0, %p283_p2  ;;  %p440_p4 = pnand %p285_p1, %p283_p2 }
  0x18   :  { %p60_p5 = pneg %p59_p3  ;;  %p63_p6 = pneg %p440_p4 }
  0x19   :  { %67 = sbr.rel (%p59_p3) target bundleno = 58 (0x3a), region = 17 }
  0x1a   :  { %p446_p7 = por %p63_p6, %p60_p5 }
  0x1e   :  { %v69_v1 = vld [vmem:[#allocation4] sm:$0xff]  ;;  %v70_v2 = vld [vmem:[#allocation4 + $0x8] sm:$0xff]  ;;  %v71_v3 = vld [vmem:[#allocation4 + $0x10] sm:$0xff] }
  0x1f   :  { %v72_v4 = vld [vmem:[#allocation4 + $0x18] sm:$0xff]  ;;  %292 = vlog2.f32 %v69_v1  ;;  %v73_v5 = vld [vmem:[#allocation4 + $0x20] sm:$0xff]  ;;  %v74_v6 = vld [vmem:[#allocation4 + $0x28] sm:$0xff] }
  0x20   :  { %294 = vlog2.f32 %v70_v2  ;;  %v75_v7 = vld [vmem:[#allocation4 + $0x30] sm:$0xff]  ;;  %v76_v9 = vld [vmem:[#allocation4 + $0x38] sm:$0xff]  ;;  %v68_v31 = vld [vmem:[#allocation7] sm:$0xff] }
  0x21   :  { %296 = vlog2.f32 %v71_v3 }
  0x22   :  { %298 = vlog2.f32 %v72_v4 }
  0x23   :  { %300 = vlog2.f32 %v73_v5 }
  0x24   :  { %302 = vlog2.f32 %v74_v6 }
  0x25   :  { %v293_v8 = vpop.eup %292  ;;  %304 = vlog2.f32 %v75_v7 }
  0x26   :  { %v295_v10 = vpop.eup %294  ;;  %v78_v11 = vmul.f32 0.6931472, %v293_v8  ;;  %306 = vlog2.f32 %v76_v9 }
  0x27   :  { %v297_v12 = vpop.eup %296  ;;  %v80_v13 = vmul.f32 0.6931472, %v295_v10 }
  0x28   :  { %v299_v14 = vpop.eup %298  ;;  %v82_v15 = vmul.f32 0.6931472, %v297_v12 }
  0x29   :  { %v301_v16 = vpop.eup %300  ;;  %v84_v17 = vmul.f32 0.6931472, %v299_v14  ;;  %v93_v18 = vadd.f32 %v80_v13, %v78_v11 }
  0x2a   :  { %v303_v19 = vpop.eup %302  ;;  %v86_v20 = vmul.f32 0.6931472, %v301_v16 }
  0x2b   :  { %v94_v21 = vadd.f32 %v93_v18, %v82_v15  ;;  %v305_v22 = vpop.eup %304  ;;  %v88_v23 = vmul.f32 0.6931472, %v303_v19 }
  0x2c   :  { %v307_v25 = vpop.eup %306  ;;  %v90_v26 = vmul.f32 0.6931472, %v305_v22 }
  0x2d   :  { %v95_v24 = vadd.f32 %v94_v21, %v84_v17  ;;  %v92_v28 = vmul.f32 0.6931472, %v307_v25 }
  0x2f   :  { %v96_v27 = vadd.f32 %v95_v24, %v86_v20 }
  0x31   :  { %v97_v29 = vadd.f32 %v96_v27, %v88_v23 }
  0x33   :  { %v98_v30 = vadd.f32 %v97_v29, %v90_v26 }
  0x35   :  { %v99_v32 = vadd.f32 %v98_v30, %v92_v28 }
  0x37   :  { %v101_v33 = vadd.f32 %v99_v32, %v68_v31 }
  0x39   :  { %102 = vst [vmem:[#allocation7] sm:$0xff] %v101_v33 }
  0x3a PF:  { %104 = sbr.rel (%p440_p4) target bundleno = 93 (0x5d), region = 21 }
  0x3f   :  { %v106_v34 = vld [vmem:[#allocation4] sm:$0xff]  ;;  %v107_v35 = vld [vmem:[#allocation4 + $0x8] sm:$0xff]  ;;  %v108_v36 = vld [vmem:[#allocation4 + $0x10] sm:$0xff] }
  0x40   :  { %v109_v37 = vld [vmem:[#allocation4 + $0x18] sm:$0xff]  ;;  %v110_v38 = vld [vmem:[#allocation4 + $0x20] sm:$0xff]  ;;  %v114_v39 = vsub.f32 1.0, %v106_v34  ;;  %v115_v40 = vsub.f32 1.0, %v107_v35  ;;  %v111_v41 = vld [vmem:[#allocation4 + $0x28] sm:$0xff]  ;;  %v116_v42 = vsub.f32 1.0, %v108_v36 }
  0x41   :  { %v117_v43 = vsub.f32 1.0, %v109_v37  ;;  %v112_v44 = vld [vmem:[#allocation4 + $0x30] sm:$0xff]  ;;  %v118_v45 = vsub.f32 1.0, %v110_v38  ;;  %v119_v46 = vsub.f32 1.0, %v111_v41  ;;  %v113_v47 = vld [vmem:[#allocation4 + $0x38] sm:$0xff]  ;;  %v105_v8 = vld [vmem:[#allocation7] sm:$0xff] }
  0x42   :  { %308 = vlog2.f32 %v114_v39  ;;  %v120_v48 = vsub.f32 1.0, %v112_v44  ;;  %v121_v49 = vsub.f32 1.0, %v113_v47 }
  0x43   :  { %310 = vlog2.f32 %v115_v40 }
  0x44   :  { %312 = vlog2.f32 %v116_v42 }
  0x45   :  { %314 = vlog2.f32 %v117_v43 }
  0x46   :  { %316 = vlog2.f32 %v118_v45 }
  0x47   :  { %318 = vlog2.f32 %v119_v46 }
  0x48   :  { %v309_v50 = vpop.eup %308  ;;  %320 = vlog2.f32 %v120_v48 }
  0x49   :  { %v311_v51 = vpop.eup %310  ;;  %v123_v52 = vmul.f32 0.6931472, %v309_v50  ;;  %322 = vlog2.f32 %v121_v49 }
  0x4a   :  { %v313_v53 = vpop.eup %312  ;;  %v125_v54 = vmul.f32 0.6931472, %v311_v51 }
  0x4b   :  { %v315_v55 = vpop.eup %314  ;;  %v127_v56 = vmul.f32 0.6931472, %v313_v53 }
  0x4c   :  { %v317_v57 = vpop.eup %316  ;;  %v129_v58 = vmul.f32 0.6931472, %v315_v55  ;;  %v138_v59 = vadd.f32 %v125_v54, %v123_v52 }
  0x4d   :  { %v319_v60 = vpop.eup %318  ;;  %v131_v61 = vmul.f32 0.6931472, %v317_v57 }
  0x4e   :  { %v139_v62 = vadd.f32 %v138_v59, %v127_v56  ;;  %v321_v63 = vpop.eup %320  ;;  %v133_v0 = vmul.f32 0.6931472, %v319_v60 }
  0x4f   :  { %v323_v2 = vpop.eup %322  ;;  %v135_v3 = vmul.f32 0.6931472, %v321_v63 }
  0x50   :  { %v140_v1 = vadd.f32 %v139_v62, %v129_v58  ;;  %v137_v5 = vmul.f32 0.6931472, %v323_v2 }
  0x52   :  { %v141_v4 = vadd.f32 %v140_v1, %v131_v61 }
  0x54   :  { %v142_v6 = vadd.f32 %v141_v4, %v133_v0 }
  0x56   :  { %v143_v7 = vadd.f32 %v142_v6, %v135_v3 }
  0x58   :  { %v144_v9 = vadd.f32 %v143_v7, %v137_v5 }
  0x5a   :  { %v146_v10 = vadd.f32 %v144_v9, %v105_v8 }
  0x5c   :  { %147 = vst [vmem:[#allocation7] sm:$0xff] %v146_v10 }
  0x5d PF:  { %149 = sbr.rel (%p446_p7) target bundleno = 140 (0x8c), region = 25 }
  0x62   :  { %v150_v11 = vlaneseq  ;;  %v187_v26 = vld [vmem:[#allocation4] sm:$0xff]  ;;  %v188_v27 = vld [vmem:[#allocation4 + $0x8] sm:$0xff]  ;;  %v189_v31 = vld [vmem:[#allocation4 + $0x10] sm:$0xff]  ;;  %v195_v32 = vstv %s433_s0  ;;  %v220_v47 = vstv %s435_s20 }
  0x63   :  { %v190_v37 = vld [vmem:[#allocation4 + $0x18] sm:$0xff]  ;;  %v191_v40 = vld [vmem:[#allocation4 + $0x20] sm:$0xff]  ;;  %v192_v41 = vld [vmem:[#allocation4 + $0x28] sm:$0xff]  ;;  %v204_v42 = vsub.f32 1.0, %v187_v26  ;;  %v205_v43 = vsub.f32 1.0, %v188_v27  ;;  %v206_v44 = vsub.f32 1.0, %v189_v31 }
  0x64   :  { %v151_v12 = vshrl.u32 %v150_v11, 7  ;;  %v160_v13 = vand.u32 127, %v150_v11  ;;  %v207_v46 = vsub.f32 1.0, %v190_v37  ;;  %v193_v49 = vld [vmem:[#allocation4 + $0x30] sm:$0xff]  ;;  %v208_v50 = vsub.f32 1.0, %v191_v40  ;;  %v194_v54 = vld [vmem:[#allocation4 + $0x38] sm:$0xff] }
  0x65   :  { %v209_v51 = vsub.f32 1.0, %v192_v41  ;;  %v210_v56 = vsub.f32 1.0, %v193_v49  ;;  %v211_v61 = vsub.f32 1.0, %v194_v54 }
  0x66   :  { %v152_v14 = vadd.s32 8, %v151_v12  ;;  %v153_v15 = vadd.s32 16, %v151_v12  ;;  %v154_v16 = vadd.s32 24, %v151_v12  ;;  %v155_v17 = vadd.s32 32, %v151_v12 }
  0x67   :  { %v156_v18 = vadd.s32 40, %v151_v12  ;;  %v157_v19 = vadd.s32 48, %v151_v12  ;;  %v158_v20 = vadd.s32 56, %v151_v12  ;;  %v161_v21 = vmul.u32 128, %v151_v12 }
  0x68   :  { %v162_v22 = vmul.u32 128, %v152_v14  ;;  %v163_v23 = vmul.u32 128, %v153_v15  ;;  %v164_v24 = vmul.u32 128, %v154_v16  ;;  %v165_v25 = vmul.u32 128, %v155_v17 }
  0x69   :  { %v166_v28 = vmul.u32 128, %v156_v18  ;;  %v167_v29 = vmul.u32 128, %v157_v19  ;;  %v178_v30 = vadd.s32 %v161_v21, %v160_v13  ;;  %v168_v33 = vmul.u32 128, %v158_v20 }
  0x6a   :  { %v179_v34 = vadd.s32 %v162_v22, %v160_v13  ;;  %v180_v35 = vadd.s32 %v163_v23, %v160_v13  ;;  %v181_v36 = vadd.s32 %v164_v24, %v160_v13  ;;  %v182_v38 = vadd.s32 %v165_v25, %v160_v13 }
  0x6b   :  { %v183_v39 = vadd.s32 %v166_v28, %v160_v13  ;;  %vm196_vm0 = vcmp.lt.s32.totalorder %v178_v30, %v195_v32  ;;  %v184_v45 = vadd.s32 %v167_v29, %v160_v13  ;;  %v185_v48 = vadd.s32 %v168_v33, %v160_v13  ;;  %v186_v29 = vld [vmem:[#allocation7] sm:$0xff] }
  0x6c   :  { %vm197_vm1 = vcmp.lt.s32.totalorder %v179_v34, %v195_v32  ;;  %vm198_vm2 = vcmp.lt.s32.totalorder %v180_v35, %v195_v32  ;;  %vm199_vm3 = vcmp.lt.s32.totalorder %v181_v36, %v195_v32  ;;  %vm200_vm4 = vcmp.lt.s32.totalorder %v182_v38, %v195_v32 }
  0x6d   :  { %vm201_vm5 = vcmp.lt.s32.totalorder %v183_v39, %v195_v32  ;;  %v212_v52 = vsel %vm196_vm0, %v187_v26, %v204_v42  ;;  %v213_v53 = vsel %vm197_vm1, %v188_v27, %v205_v43  ;;  %v214_v55 = vsel %vm198_vm2, %v189_v31, %v206_v44 }
  0x6e   :  { %vm221_vm6 = vcmp.lt.s32.totalorder %v178_v30, %v220_v47  ;;  %vm222_vm7 = vcmp.lt.s32.totalorder %v179_v34, %v220_v47  ;;  %vm223_vm8 = vcmp.lt.s32.totalorder %v180_v35, %v220_v47  ;;  %vm202_vm9 = vcmp.lt.s32.totalorder %v184_v45, %v195_v32 }
  0x6f   :  { %v215_v57 = vsel %vm199_vm3, %v190_v37, %v207_v46  ;;  %vm224_vm10 = vcmp.lt.s32.totalorder %v181_v36, %v220_v47  ;;  %v216_v58 = vsel %vm200_vm4, %v191_v40, %v208_v50  ;;  %vm225_vm11 = vcmp.lt.s32.totalorder %v182_v38, %v220_v47 }
  0x70   :  { %v229_v59 = vsel %vm221_vm6, %v212_v52, 1.0  ;;  %v230_v60 = vsel %vm222_vm7, %v213_v53, 1.0  ;;  %v217_v62 = vsel %vm201_vm5, %v192_v41, %v209_v51  ;;  %vm226_vm12 = vcmp.lt.s32.totalorder %v183_v39, %v220_v47 }
  0x71   :  { %v231_v63 = vsel %vm223_vm8, %v214_v55, 1.0  ;;  %vm203_vm13 = vcmp.lt.s32.totalorder %v185_v48, %v195_v32  ;;  %v232_v0 = vsel %vm224_vm10, %v215_v57, 1.0  ;;  %324 = vlog2.f32 %v229_v59 }
  0x72   :  { %v218_v1 = vsel %vm202_vm9, %v193_v49, %v210_v56  ;;  %vm227_vm14 = vcmp.lt.s32.totalorder %v184_v45, %v220_v47  ;;  %v233_v2 = vsel %vm225_vm11, %v216_v58, 1.0  ;;  %326 = vlog2.f32 %v230_v60 }
  0x73   :  { %v234_v3 = vsel %vm226_vm12, %v217_v62, 1.0  ;;  %328 = vlog2.f32 %v231_v63  ;;  %v219_v4 = vsel %vm203_vm13, %v194_v54, %v211_v61  ;;  %vm228_vm15 = vcmp.lt.s32.totalorder %v185_v48, %v220_v47 }
  0x74   :  { %330 = vlog2.f32 %v232_v0  ;;  %v235_v5 = vsel %vm227_vm14, %v218_v1, 1.0  ;;  %v236_v7 = vsel %vm228_vm15, %v219_v4, 1.0 }
  0x75   :  { %332 = vlog2.f32 %v233_v2 }
  0x76   :  { %334 = vlog2.f32 %v234_v3 }
  0x77   :  { %v325_v6 = vpop.eup %324  ;;  %336 = vlog2.f32 %v235_v5 }
  0x78   :  { %v327_v8 = vpop.eup %326  ;;  %v238_v9 = vmul.f32 0.6931472, %v325_v6  ;;  %338 = vlog2.f32 %v236_v7 }
  0x79   :  { %v329_v10 = vpop.eup %328  ;;  %v240_v11 = vmul.f32 0.6931472, %v327_v8 }
  0x7a   :  { %v331_v12 = vpop.eup %330  ;;  %v242_v13 = vmul.f32 0.6931472, %v329_v10 }
  0x7b   :  { %v333_v14 = vpop.eup %332  ;;  %v244_v15 = vmul.f32 0.6931472, %v331_v12  ;;  %v253_v16 = vadd.f32 %v240_v11, %v238_v9 }
  0x7c   :  { %v335_v17 = vpop.eup %334  ;;  %v246_v18 = vmul.f32 0.6931472, %v333_v14 }
  0x7d   :  { %v254_v19 = vadd.f32 %v253_v16, %v242_v13  ;;  %v337_v20 = vpop.eup %336  ;;  %v248_v21 = vmul.f32 0.6931472, %v335_v17 }
  0x7e   :  { %v339_v23 = vpop.eup %338  ;;  %v250_v24 = vmul.f32 0.6931472, %v337_v20 }
  0x7f   :  { %v255_v22 = vadd.f32 %v254_v19, %v244_v15  ;;  %v252_v26 = vmul.f32 0.6931472, %v339_v23 }
  0x81   :  { %v256_v25 = vadd.f32 %v255_v22, %v246_v18 }
  0x83   :  { %v257_v27 = vadd.f32 %v256_v25, %v248_v21 }
  0x85   :  { %v258_v28 = vadd.f32 %v257_v27, %v250_v24 }
  0x87   :  { %v259_v30 = vadd.f32 %v258_v28, %v252_v26 }
  0x89   :  { %v261_v31 = vadd.f32 %v259_v30, %v186_v29 }
  0x8b   :  { %262 = vst [vmem:[#allocation7] sm:$0xff] %v261_v31 }
  0x8c PF:  { %s270_s24 = sshll.u32 %s462_s2, 4  ;;  %s411_s25 = smov [#allocation7]   ;;  %s271_s24 = int_to_ptr.hbm [resolvable:$true] %s270_s24 }
  0x8d   :  { %s268_s26 = sshll.u32 %s411_s25, 4  ;;  %s269_s26 = int_to_ptr.vmem [resolvable:$true] %s268_s26 }
  0x8e   :  { %273 = dma.vmem_to_hbm [thread:$0]  %s269_s26, 128, %s271_s24, [#allocation6]  }
  0x8f   :  { %404 = dma.done.wait [#allocation6], 128  }
  0x90   :  { %405 = vsyncadd [#allocation6], 4294967168 }
  0x91   :  { %278 = vsyncpa [#allocation5], 1 }
  0x92   :  { %279 = vsyncpa [#allocation6], 1 }

</bundles_post_ra>
